<compile_context>
chip_gen: v6e
topology: v6e:2x2x1
jax: 0.10.0
libtpu: 0.0.40
codegen_flags: <defaults>
</compile_context>

<pallas_src>
import functools

import jax
import jax.numpy as jnp
from jax.experimental import pallas as pl
from jax.experimental.pallas import tpu as pltpu

DECAY = 0.9997

_LANE = 512         # last dim of the flat EMA buffer (multiple of 128 -> lane dense)
_MAX_TILE_R = 1024  # rows/tile: 1024*512*4B = 2 MiB/stream; 3 streams x 2 bufs = 12 MiB


def _round_up(x: int, m: int) -> int:
    return (x + m - 1) // m * m


# ----------------------------------------------------------------------------
# pytree <-> flat lane-dense buffer helpers (EMA state_dict fusion)
# ----------------------------------------------------------------------------
def _flatten_params(params):
    leaves, treedef = jax.tree_util.tree_flatten(params)
    dtype = leaves[0].dtype
    # TODO(synk): mixed-dtype state_dicts (e.g. int batch-norm counters) would need
    # per-dtype grouping; this toy module is all-f32.
    assert all(l.dtype == dtype for l in leaves), "all leaves must share a dtype"
    shapes = [l.shape for l in leaves]
    sizes = [int(l.size) for l in leaves]
    flat = jnp.concatenate([l.ravel() for l in leaves])
    return flat, (treedef, tuple(shapes), tuple(sizes))


def _unflatten_params(flat, meta):
    treedef, shapes, sizes = meta
    out, off = [], 0
    for shape, size in zip(shapes, sizes):
        out.append(flat[off:off + size].reshape(shape))
        off += size
    return jax.tree_util.tree_unflatten(treedef, out)


def _tile_layout(n: int):
    """Rows, tile rows and padded rows for an n-element flat buffer."""
    r = pl.cdiv(n, _LANE)
    tile_r = _MAX_TILE_R if r >= _MAX_TILE_R else _round_up(r, 8)
    r_pad = _round_up(r, tile_r)
    return tile_r, r_pad


# ----------------------------------------------------------------------------
# Kernel 1: fused EMA parameter update  (ema = decay * ema + (1 - decay) * net)
# ----------------------------------------------------------------------------
def _ema_fused_kernel(ema_ref, net_ref, out_ref, *, decay):
    # Blend in f32 regardless of storage dtype (bf16 cannot represent 1-decay well).
    e = ema_ref[...].astype(jnp.float32)
    m = net_ref[...].astype(jnp.float32)
    out_ref[...] = (decay * e + (1.0 - decay) * m).astype(out_ref.dtype)


@functools.partial(jax.jit, donate_argnums=(0,), static_argnames=("decay", "tile_r", "n"))
def _ema_update_flat(ema2d, net_params, *, decay, tile_r, n):
    """One fused, tiled, aliased Pallas call over the whole (flat) state dict."""
    r_pad = ema2d.shape[0]
    net_flat, _ = _flatten_params(net_params)
    pad = r_pad * _LANE - n
    net2d = jnp.pad(net_flat, (0, pad)).reshape(r_pad, _LANE)

    return pl.pallas_call(
        functools.partial(_ema_fused_kernel, decay=decay),
        out_shape=jax.ShapeDtypeStruct((r_pad, _LANE), ema2d.dtype),
        grid=(r_pad // tile_r,),
        in_specs=[
            pl.BlockSpec((tile_r, _LANE), lambda i: (i, 0)),
            pl.BlockSpec((tile_r, _LANE), lambda i: (i, 0)),
        ],
        out_specs=pl.BlockSpec((tile_r, _LANE), lambda i: (i, 0)),
        input_output_aliases={0: 0},  # in-place semantics: output reuses the ema buffer
        compiler_params=pltpu.CompilerParams(
            dimension_semantics=("parallel",),     # megacore sharding on v7x
            vmem_limit_bytes=32 * 1024 * 1024,     # fits v5e/v6e/v7x scoped VMEM
        ),
    )(ema2d, net2d)


# ---- EMA "module" state: persistent flat buffer + layout metadata -----------
def ema_set(net_params):
    """EMA.__init__ / EMA.set: re-base the EMA weights (deep copy into flat buffer)."""
    flat, meta = _flatten_params(net_params)
    n = int(flat.size)
    tile_r, r_pad = _tile_layout(n)
    pad = r_pad * _LANE - n
    ema2d = jnp.pad(flat, (0, pad)).reshape(r_pad, _LANE)
    return {"buf": ema2d, "meta": meta, "n": n, "tile_r": tile_r}


def ema_update(state, net_params, decay=DECAY):
    """EMA.update: blend the persistent flat EMA buffer toward the net params."""
    new_buf = _ema_update_flat(
        state["buf"], net_params, decay=decay, tile_r=state["tile_r"], n=state["n"]
    )
    return {"buf": new_buf, "meta": state["meta"], "n": state["n"], "tile_r": state["tile_r"]}


def ema_params(state):
    """Materialize the EMA weights back into the original pytree structure."""
    flat = state["buf"].reshape(-1)[: state["n"]]
    return _unflatten_params(flat, state["meta"])


# ----------------------------------------------------------------------------
# Kernel 2: forward pass of the wrapped network (small MLP), using EMA weights
# ----------------------------------------------------------------------------
def _mlp_fwd_kernel(x_ref, w1_ref, b1_ref, w2_ref, b2_ref, o_ref):
    x = x_ref[...]
    h = jnp.tanh(
        jnp.dot(x, w1_ref[...], preferred_element_type=jnp.float32) + b1_ref[...]
    )
    o = jnp.dot(h, w2_ref[...], preferred_element_type=jnp.float32) + b2_ref[...]
    o_ref[...] = o.astype(o_ref.dtype)


def ema_forward(state, x):
    """EMA.forward: run the wrapped MLP with the EMA parameters.

    All feature dims are zero-padded to 128-lane multiples so loads/stores are
    lane-dense (no masked vst) and MXU tiles are aligned; padding contributes
    exact zeros so the math is unchanged.  Single block, no grid (tiny sizes).
    """
    params = ema_params(state)
    w1, b1, w2, b2 = params["w1"], params["b1"], params["w2"], params["b2"]
    B, IN = x.shape
    HID, OUT = w1.shape[1], w2.shape[1]
    LANE = 128
    B_P = _round_up(B, 8)
    IN_P, HID_P, OUT_P = _round_up(IN, LANE), _round_up(HID, LANE), _round_up(OUT, LANE)

    xp = jnp.pad(x, ((0, B_P - B), (0, IN_P - IN)))
    w1p = jnp.pad(w1, ((0, IN_P - IN), (0, HID_P - HID)))
    b1p = jnp.pad(b1, ((0, 0), (0, HID_P - HID)))
    w2p = jnp.pad(w2, ((0, HID_P - HID), (0, OUT_P - OUT)))
    b2p = jnp.pad(b2, ((0, 0), (0, OUT_P - OUT)))

    # NOTE: for a real-sized wrapped net on v6e/v7x, cast dot inputs to bf16 with
    # f32 accumulation; kept f32 here to match the f32 reference closely.
    out = pl.pallas_call(
        _mlp_fwd_kernel,
        out_shape=jax.ShapeDtypeStruct((B_P, OUT_P), x.dtype),
        in_specs=[pl.BlockSpec(memory_space=pltpu.MemorySpace.VMEM)] * 5,
        out_specs=pl.BlockSpec(memory_space=pltpu.MemorySpace.VMEM),
        compiler_params=pltpu.CompilerParams(vmem_limit_bytes=32 * 1024 * 1024),
    )(xp, w1p, b1p, w2p, b2p)
    return out[:B, :OUT]


# ----------------------------------------------------------------------------
# Pure-JAX references
# ----------------------------------------------------------------------------
def ref_update(ema_params_, net_params, decay=DECAY):
    return jax.tree_util.tree_map(
        lambda e, m: decay * e + (1.0 - decay) * m, ema_params_, net_params
    )


def ref_forward(params, x):
    h = jnp.tanh(x @ params["w1"] + params["b1"])
    return h @ params["w2"] + params["b2"]


# ----------------------------------------------------------------------------
if __name__ == "__main__":
    key = jax.random.PRNGKey(0)
    k1, k2, k3, k4, k5, k6 = jax.random.split(key, 6)

    B, IN, HID, OUT = 16, 32, 64, 32

    # Deterministic init of the "bare network" parameters.
    net_params = {
        "w1": jax.random.normal(k1, (IN, HID), jnp.float32) * 0.1,
        "b1": jax.random.normal(k2, (1, HID), jnp.float32) * 0.01,
        "w2": jax.random.normal(k3, (HID, OUT), jnp.float32) * 0.1,
        "b2": jax.random.normal(k4, (1, OUT), jnp.float32) * 0.01,
    }

    # EMA.__init__ / EMA.set: deep-copy the network weights into the persistent
    # flat EMA buffer (independent storage; updates donate/alias that buffer).
    ema_state = ema_set(net_params)
    ref_ema = jax.tree_util.tree_map(jnp.copy, net_params)

    # Simulate a few training steps on the bare network, then EMA.update.
    for step in range(3):
        noise_key = jax.random.fold_in(k5, step)
        net_params = {
            name: p
            + 0.05
            * jax.random.normal(jax.random.fold_in(noise_key, i), p.shape, p.dtype)
            for i, (name, p) in enumerate(sorted(net_params.items()))
        }
        ema_state = ema_update(ema_state, net_params)   # fused Pallas kernel
        ref_ema = ref_update(ref_ema, net_params)       # reference

    # EMA.forward: evaluate the wrapped module with the EMA weights.
    x = jax.random.normal(k6, (B, IN), jnp.float32)
    out = ema_forward(ema_state, x)                     # Pallas kernel
    out = jax.block_until_ready(out)

    # Correctness checks against pure-JAX references.
    ema_p = ema_params(ema_state)
    for name in ("w1", "b1", "w2", "b2"):
        assert jnp.allclose(ema_p[name], ref_ema[name], atol=1e-6, rtol=1e-6), name
    ref_out = ref_forward(ref_ema, x)
    assert out.shape == (B, OUT)
    assert jnp.allclose(out, ref_out, atol=1e-5, rtol=1e-5)

    print("KERNEL_OK")
</pallas_src>

<mosaic_0001>
module attributes {stable_mosaic.version = 11 : i64} {
  func.func @_ema_fused_kernel(%arg0: i32, %arg1: memref<16x512xf32, #tpu.memory_space<vmem>>, %arg2: memref<16x512xf32, #tpu.memory_space<vmem>>, %arg3: memref<16x512xf32, #tpu.memory_space<vmem>>) attributes {dimension_semantics = [#tpu.dimension_semantics<parallel>], iteration_bounds = array<i64: 1>, scalar_prefetch = 0 : i64, scratch_operands = 0 : i64, tpu.core_type = #tpu.core_type<tc>, window_params = [{transform_indices = @transform_0, window_bounds = array<i64: 16, 512>}, {transform_indices = @transform_1, window_bounds = array<i64: 16, 512>}, {transform_indices = @transform_2, window_bounds = array<i64: 16, 512>}]} {
    %c0 = arith.constant 0 : index
    %c0_0 = arith.constant 0 : index
    %0 = vector.load %arg1[%c0, %c0_0] : memref<16x512xf32, #tpu.memory_space<vmem>>, vector<16x512xf32>
    %c0_1 = arith.constant 0 : index
    %c0_2 = arith.constant 0 : index
    %1 = vector.load %arg2[%c0_1, %c0_2] : memref<16x512xf32, #tpu.memory_space<vmem>>, vector<16x512xf32>
    %cst = arith.constant 9.997000e-01 : f32
    %2 = vector.broadcast %cst : f32 to vector<16x512xf32>
    %3 = arith.mulf %2, %0 : vector<16x512xf32>
    %cst_3 = arith.constant 3.000000e-04 : f32
    %4 = vector.broadcast %cst_3 : f32 to vector<16x512xf32>
    %5 = arith.mulf %4, %1 : vector<16x512xf32>
    %6 = arith.addf %3, %5 : vector<16x512xf32>
    %c0_4 = arith.constant 0 : index
    %c0_5 = arith.constant 0 : index
    %7 = vector.load %arg3[%c0_4, %c0_5] : memref<16x512xf32, #tpu.memory_space<vmem>>, vector<16x512xf32>
    tpu.vector_store %arg3[%c0_4, %c0_5], %6 {strides = array<i32>} : memref<16x512xf32, #tpu.memory_space<vmem>>, vector<16x512xf32>,
    return
  }
  func.func @transform_0(%arg0: i32) -> (i32, i32) {
    %c0_i32 = arith.constant 0 : i32
    %c0_i32_0 = arith.constant 0 : i32
    return %arg0, %c0_i32 : i32, i32
  }
  func.func @transform_1(%arg0: i32) -> (i32, i32) {
    %c0_i32 = arith.constant 0 : i32
    %c0_i32_0 = arith.constant 0 : i32
    return %arg0, %c0_i32 : i32, i32
  }
  func.func @transform_2(%arg0: i32) -> (i32, i32) {
    %c0_i32 = arith.constant 0 : i32
    %c0_i32_0 = arith.constant 0 : i32
    return %arg0, %c0_i32 : i32, i32
  }
}

</mosaic_0001>

<bundles_post_ra>
// kernel: _ema_update_flat.1
= control target key start
LH: loop header
LB: loop body
LE: loop exit
PB: predicated region body
PF: predicated region fallthrough
CT: control target
= control target key end

     0   :  { %7 = vsyncpa [#allocation3], 0  ;;  %s194_s0 = inlined_call_operand.hbm [shape: f32[16,512], index: 0, kind: input, shape index: {}, may-alias: {0,2}]   ;;  %s195_s1 = inlined_call_operand.vmem [shape: f32[16,512], index: 1, kind: input, shape index: {}]   ;;  %s196_s2 = inlined_call_operand.hbm [shape: f32[16,512], index: 2, kind: output, shape index: {}, may-alias: {0,2}]  }
   0x1   :  { %8 = vsyncpa [#allocation4], 0  ;;  %s139_s9 = smov [#allocation2]  }
   0x2   :  { %s14_s10 = sshll.u32 %s139_s9, 4  ;;  %s15_s10 = int_to_ptr.vmem [resolvable:$true] %s14_s10 }
   0x3   :  { %s103_s11 = scalar_lea.vmem %s15_s10, 1024  ;;  %p108_p1 = scmp.lt.s32.totalorder %s15_s10, %s15_s10 }
   0x4   :  { %p104_p0 = scmp.ne.s32.totalorder %s15_s10, %s103_s11  ;;  %p109_p2 = scmp.lt.s32.totalorder %s103_s11, %s103_s11 }
   0x6   :  { %p110_p3 = por %p109_p2, %p108_p1 }
   0x8   :  { %p111_p4 = pnand %p110_p3, %p104_p0 }
   0xa   :  { %114 = shalt.err (!%p111_p4)
}
   0xb   :  { %s140_s12 = smov 512   ;;  %s141_s13 = smov 32  }
   0xc   :  { %20 = dma.hbm_to_vmem [thread:$0]  %s194_s0, 1024, %s15_s10, [#allocation3], %s140_s12, %s140_s12, %s141_s13  }
   0xd   :  { %135 = dma.done.wait [#allocation3], 1024  }
   0xe   :  { %136 = vsyncadd [#allocation3], 4294966272  ;;  %v26_v0 = vld [vmem:[#allocation2] sm:$0xff]  ;;  %v27_v2 = vld [vmem:[#allocation2 + $0x8] sm:$0xff]  ;;  %s142_s3 = smov [#allocation5]  }
   0xf   :  { %v34_v1 = vld [vmem:[%s195_s1] sm:$0xff]  ;;  %v42_v3 = vmul.f32 0.9997, %v26_v0  ;;  %v35_v5 = vld [vmem:[%s195_s1 + $0x8] sm:$0xff]  ;;  %v28_v6 = vld [vmem:[#allocation2 + $0x10] sm:$0xff]  ;;  %s79_s4 = sshll.u32 %s142_s3, 4  ;;  %s80_s4 = int_to_ptr.vmem [resolvable:$true] %s79_s4 }
  0x10   :  { %v50_v4 = vmul.f32 0.0003, %v34_v1  ;;  %v43_v7 = vmul.f32 0.9997, %v27_v2  ;;  %v51_v8 = vmul.f32 0.0003, %v35_v5  ;;  %p120_p6 = scmp.lt.s32.totalorder %s80_s4, %s80_s4 }
  0x11   :  { %v36_v9 = vld [vmem:[%s195_s1 + $0x10] sm:$0xff]  ;;  %v29_v10 = vld [vmem:[#allocation2 + $0x18] sm:$0xff]  ;;  %v44_v12 = vmul.f32 0.9997, %v28_v6  ;;  %v30_v15 = vld [vmem:[#allocation2 + $0x20] sm:$0xff]  ;;  %s115_s5 = scalar_lea.vmem %s80_s4, 1024 }
  0x12   :  { %v58_v11 = vadd.f32 %v50_v4, %v42_v3  ;;  %v52_v13 = vmul.f32 0.0003, %v36_v9  ;;  %v37_v14 = vld [vmem:[%s195_s1 + $0x18] sm:$0xff]  ;;  %v59_v16 = vadd.f32 %v51_v8, %v43_v7  ;;  %v45_v17 = vmul.f32 0.9997, %v29_v10  ;;  %v38_v19 = vld [vmem:[%s195_s1 + $0x20] sm:$0xff]  ;;  %p116_p5 = scmp.ne.s32.totalorder %s80_s4, %s115_s5  ;;  %p121_p7 = scmp.lt.s32.totalorder %s115_s5, %s115_s5 }
  0x13   :  { %v53_v18 = vmul.f32 0.0003, %v37_v14  ;;  %v31_v20 = vld [vmem:[#allocation2 + $0x28] sm:$0xff]  ;;  %v46_v22 = vmul.f32 0.9997, %v30_v15  ;;  %v32_v25 = vld [vmem:[#allocation2 + $0x30] sm:$0xff] }
  0x14   :  { %66 = vst [vmem:[#allocation5] sm:$0xff] %v58_v11  ;;  %v60_v21 = vadd.f32 %v52_v13, %v44_v12  ;;  %v54_v23 = vmul.f32 0.0003, %v38_v19  ;;  %v39_v24 = vld [vmem:[%s195_s1 + $0x28] sm:$0xff]  ;;  %67 = vst [vmem:[#allocation5 + $0x8] sm:$0xff] %v59_v16  ;;  %v40_v29 = vld [vmem:[%s195_s1 + $0x30] sm:$0xff]  ;;  %p122_p8 = por %p121_p7, %p120_p6 }
  0x15   :  { %v61_v26 = vadd.f32 %v53_v18, %v45_v17  ;;  %v47_v27 = vmul.f32 0.9997, %v31_v20  ;;  %v55_v28 = vmul.f32 0.0003, %v39_v24  ;;  %v33_v30 = vld [vmem:[#allocation2 + $0x38] sm:$0xff] }
  0x16   :  { %68 = vst [vmem:[#allocation5 + $0x10] sm:$0xff] %v60_v21  ;;  %v62_v31 = vadd.f32 %v54_v23, %v46_v22  ;;  %v48_v32 = vmul.f32 0.9997, %v32_v25  ;;  %v56_v33 = vmul.f32 0.0003, %v40_v29  ;;  %v41_v34 = vld [vmem:[%s195_s1 + $0x38] sm:$0xff]  ;;  %p123_p9 = pnand %p122_p8, %p116_p5 }
  0x17   :  { %69 = vst [vmem:[#allocation5 + $0x18] sm:$0xff] %v61_v26  ;;  %v63_v35 = vadd.f32 %v55_v28, %v47_v27  ;;  %v49_v36 = vmul.f32 0.9997, %v33_v30  ;;  %v57_v37 = vmul.f32 0.0003, %v41_v34 }
  0x18   :  { %70 = vst [vmem:[#allocation5 + $0x20] sm:$0xff] %v62_v31  ;;  %v64_v38 = vadd.f32 %v56_v33, %v48_v32 }
  0x19   :  { %71 = vst [vmem:[#allocation5 + $0x28] sm:$0xff] %v63_v35  ;;  %v65_v39 = vadd.f32 %v57_v37, %v49_v36 }
  0x1a   :  { %72 = vst [vmem:[#allocation5 + $0x30] sm:$0xff] %v64_v38 }
  0x1b   :  { %73 = vst [vmem:[#allocation5 + $0x38] sm:$0xff] %v65_v39 }
  0x1c   :  { %126 = shalt.err (!%p123_p9)
}
  0x1d   :  { %85 = dma.vmem_to_hbm [thread:$0]  %s80_s4, 1024, %s196_s2, [#allocation4], %s140_s12, %s140_s12, %s141_s13  }
  0x1e   :  { %137 = dma.done.wait [#allocation4], 1024  }
  0x1f   :  { %138 = vsyncadd [#allocation4], 4294966272 }
  0x20   :  { %89 = vsyncpa [#allocation3], 1 }
  0x21   :  { %90 = vsyncpa [#allocation4], 1 }

</bundles_post_ra>
